<compile_context>
chip_gen: v6e
topology: v6e:2x2x1
jax: 0.10.0
libtpu: 0.0.40
codegen_flags: <defaults>
</compile_context>

<pallas_src>
import jax
import jax.numpy as jnp
from jax.experimental import pallas as pl
from jax.experimental.pallas import tpu as pltpu


# --------------------------------------------------------------------------- #
# Chip introspection (robust: falls back to conservative defaults)
# --------------------------------------------------------------------------- #
def _chip_info():
    """Return (physical_vmem_bytes, tensorcores_per_chip) with safe fallbacks."""
    vmem_bytes = 64 << 20          # conservative (v7x) so we never over-commit
    num_cores = 1
    try:
        info = pltpu.get_tpu_info()
        v = getattr(info, "vmem_capacity_bytes", None)
        if isinstance(v, int) and v > 0:
            vmem_bytes = v
        for name in ("num_cores", "core_count", "tensorcore_count",
                     "num_tensorcores", "cores_per_chip"):
            c = getattr(info, name, None)
            if isinstance(c, int) and c > 0:
                num_cores = c
                break
    except Exception:
        pass
    if num_cores == 1:
        # Last-resort hint: v7x has 2 TensorCores per chip.
        try:
            kind = jax.devices()[0].device_kind.lower()
            if "v7" in kind:
                num_cores = 2
        except Exception:
            pass
    return vmem_bytes, num_cores


def _round_up(v, m):
    return ((v + m - 1) // m) * m


def _invariant_spec(shape):
    """BlockSpec for a grid-invariant operand; single-buffer it to save VMEM."""
    index_map = lambda i: (0, 0)
    try:
        return pl.BlockSpec(shape, index_map, pipeline_mode=pl.Buffered(1))
    except (TypeError, AttributeError):   # older JAX without pipeline_mode kwarg
        return pl.BlockSpec(shape, index_map)


# --------------------------------------------------------------------------- #
# Kernel
# --------------------------------------------------------------------------- #
def _make_kernel(num_extra):
    def kernel(*refs):
        # refs = (x, w, b, *extras, o)
        x_ref, w_ref, b_ref = refs[0], refs[1], refs[2]
        extra_refs = refs[3:3 + num_extra]
        o_ref = refs[3 + num_extra]

        x = x_ref[...].astype(jnp.float32)          # (tm, d_inp)
        w = w_ref[...].astype(jnp.float32)          # (d_inp, d_model)
        d_inp = w.shape[0]

        # K is tiny (1..6): unrolled broadcast FMAs on the VPU (MXU stays free).
        acc = x[:, 0:1] * w[0:1, :]
        for k in range(1, d_inp):
            acc = acc + x[:, k:k + 1] * w[k:k + 1, :]
        acc = acc + b_ref[...].astype(jnp.float32)

        # Optional fused consumer adds (value / positional embeddings).
        for e_ref in extra_refs:
            acc = acc + e_ref[...].astype(jnp.float32)

        o_ref[...] = acc.astype(o_ref.dtype)
    return kernel


# --------------------------------------------------------------------------- #
# Wrapper
# --------------------------------------------------------------------------- #
def time_feature_embedding(x, weight, bias, *, tile_m=1024, out_dtype=None,
                           fuse_add=None):
    """TimeFeatureEmbedding forward: y = x @ W^T + b (+ optional fused addends).

    x:        (B, L, d_inp)    time features (d_inp = freq_map[freq], 1..6)
    weight:   (d_model, d_inp) PyTorch nn.Linear layout
    bias:     (d_model,)
    out_dtype: output dtype (default x.dtype; pass jnp.bfloat16 in bf16 models
               to halve the dominant HBM-writeback bytes)
    fuse_add: optional list of (B, L, d_model) tensors summed into the output
              inside the kernel (fuses the embedding-sum consumer so the
              (M, d_model) tensor never round-trips HBM).
    Returns (B, L, d_model) in out_dtype.

    NOTE: for lane-dense unmasked writeback keep d_model a multiple of 128;
    small d_model (like the demo's 32) is correct but uses masked stores.
    """
    B, L, d_inp = x.shape
    d_model = weight.shape[0]
    out_dtype = x.dtype if out_dtype is None else out_dtype
    M = B * L

    extras = [] if fuse_add is None else list(fuse_add)
    extras2 = [e.reshape(M, d_model) for e in extras]

    x2 = x.reshape(M, d_inp)
    w_t = weight.T                          # (d_inp, d_model)
    b2 = bias.reshape(1, d_model)

    # --- Per-chip VMEM budget (same number drives tile cap AND compiler) ----
    phys_vmem, num_cores = _chip_info()
    budget = min(96 << 20, (phys_vmem * 3) // 4)      # 48 MiB on v7x, 96 MiB on v5e/v6e

    # --- Honest per-row VMEM accounting --------------------------------------
    lane = 128
    d_model_pad = _round_up(d_model, lane)
    out_isz = jnp.dtype(out_dtype).itemsize
    x_isz = jnp.dtype(x2.dtype).itemsize
    # x block: last dim (d_inp <= 6) lane-pads to 128 in VMEM.
    x_row_bytes = lane * x_isz
    out_row_bytes = d_model_pad * out_isz
    extra_row_bytes = sum(d_model_pad * jnp.dtype(e.dtype).itemsize for e in extras2)
    bytes_per_row = 2 * (x_row_bytes + out_row_bytes + extra_row_bytes)  # double-buffered
    # Grid-invariant operands (weight sublane-pads to 8 rows, bias to 8 rows);
    # count x2 as slack for Mosaic internal scratch / layout copies.
    fixed_bytes = 2 * (_round_up(d_inp, 8) + 8) * d_model_pad * jnp.dtype(w_t.dtype).itemsize
    usable = max(1 << 20, budget - fixed_bytes - (4 << 20))

    # Sublane multiple for the writeback tile (f32: 8, bf16: 16, int8/fp8: 32).
    sub_mult = max(8, 32 // out_isz)

    tm_cap = max(sub_mult, (usable // bytes_per_row) // sub_mult * sub_mult)
    tm = max(sub_mult, (min(tile_m, tm_cap) // sub_mult) * sub_mult)

    if M <= tm:
        if num_cores > 1 and M > sub_mult:
            # Multi-TC chip: split rows across cores (even grid).
            tm = _round_up(pl.cdiv(M, num_cores), sub_mult)
        else:
            tm = M                       # single full-extent block (always legal)
    elif num_cores > 1:
        # Make the number of grid steps a multiple of the core count so both
        # TensorCores carry the same HBM traffic.
        grid_target = _round_up(pl.cdiv(M, tm), num_cores)
        tm = max(sub_mult, _round_up(pl.cdiv(M, grid_target), sub_mult))

    grid_m = pl.cdiv(M, tm)              # partial edge block masked by Pallas

    row_spec_out = pl.BlockSpec((tm, d_model), lambda i: (i, 0))
    in_specs = [
        pl.BlockSpec((tm, d_inp), lambda i: (i, 0)),
        _invariant_spec((d_inp, d_model)),    # weight: constant block
        _invariant_spec((1, d_model)),        # bias:   constant block
    ] + [pl.BlockSpec((tm, d_model), lambda i: (i, 0)) for _ in extras2]

    out = pl.pallas_call(
        _make_kernel(len(extras2)),
        out_shape=jax.ShapeDtypeStruct((M, d_model), out_dtype),
        grid_spec=pltpu.PrefetchScalarGridSpec(
            num_scalar_prefetch=0,
            grid=(grid_m,),
            in_specs=in_specs,
            out_specs=row_spec_out,
        ),
        compiler_params=pltpu.CompilerParams(
            dimension_semantics=("parallel",),
            vmem_limit_bytes=int(budget),
        ),
    )(x2, w_t, b2, *extras2)

    return out.reshape(B, L, d_model)


# --------------------------------------------------------------------------- #
# Demo / correctness checks
# --------------------------------------------------------------------------- #
if __name__ == "__main__":
    key = jax.random.PRNGKey(0)
    k_x, k_w, k_b, k_e1, k_e2 = jax.random.split(key, 5)

    B, L = 2, 8
    d_inp = 4            # freq='h'
    d_model = 32

    x = jax.random.normal(k_x, (B, L, d_inp), dtype=jnp.float32)
    # Deterministic init mimicking nn.Linear default (uniform in +-1/sqrt(d_inp)).
    bound = 1.0 / (d_inp ** 0.5)
    weight = jax.random.uniform(k_w, (d_model, d_inp), jnp.float32, -bound, bound)
    bias = jax.random.uniform(k_b, (d_model,), jnp.float32, -bound, bound)

    # 1) Plain forward (drop-in nn.Linear semantics).
    y = time_feature_embedding(x, weight, bias)
    jax.block_until_ready(y)
    y_ref = x @ weight.T + bias
    assert y.shape == (B, L, d_model)
    assert jnp.allclose(y, y_ref, atol=1e-5, rtol=1e-5)

    # 2) Ragged multi-step grid (partial edge block masked by Pallas).
    B2, L2 = 3, 7                         # M = 21 rows
    x_r = jax.random.normal(k_x, (B2, L2, d_inp), dtype=jnp.float32)
    y_r = time_feature_embedding(x_r, weight, bias, tile_m=8)
    jax.block_until_ready(y_r)
    assert jnp.allclose(y_r, x_r @ weight.T + bias, atol=1e-5, rtol=1e-5)

    # 3) Fused-consumer path (value + positional embedding added in-kernel)
    #    with bf16 writeback (halved HBM bytes).
    val_emb = jax.random.normal(k_e1, (B, L, d_model), dtype=jnp.float32)
    pos_emb = jax.random.normal(k_e2, (B, L, d_model), dtype=jnp.float32)
    y_f = time_feature_embedding(x, weight, bias,
                                 out_dtype=jnp.bfloat16,
                                 fuse_add=[val_emb, pos_emb])
    jax.block_until_ready(y_f)
    y_f_ref = y_ref + val_emb + pos_emb
    assert y_f.dtype == jnp.bfloat16
    assert jnp.allclose(y_f.astype(jnp.float32), y_f_ref, atol=5e-2, rtol=5e-2)

    print("KERNEL_OK")
</pallas_src>

<mosaic_0001>
module attributes {stable_mosaic.version = 11 : i64} {
  func.func @kernel(%arg0: i32, %arg1: memref<16x4xf32, #tpu.memory_space<vmem>>, %arg2: memref<4x32xf32, #tpu.memory_space<vmem>>, %arg3: memref<1x32xf32, #tpu.memory_space<vmem>>, %arg4: memref<16x32xf32, #tpu.memory_space<vmem>>) attributes {dimension_semantics = [#tpu.dimension_semantics<parallel>], iteration_bounds = array<i64: 1>, scalar_prefetch = 0 : i64, scratch_operands = 0 : i64, tpu.core_type = #tpu.core_type<tc>, window_params = [{transform_indices = @transform_0, window_bounds = array<i64: 16, 4>}, {pipeline_mode = #tpu.pipeline_mode<synchronous>, transform_indices = @transform_1, window_bounds = array<i64: 4, 32>}, {pipeline_mode = #tpu.pipeline_mode<synchronous>, transform_indices = @transform_2, window_bounds = array<i64: 1, 32>}, {transform_indices = @transform_3, window_bounds = array<i64: 16, 32>}]} {
    %c0 = arith.constant 0 : index
    %c0_0 = arith.constant 0 : index
    %0 = vector.load %arg1[%c0, %c0_0] : memref<16x4xf32, #tpu.memory_space<vmem>>, vector<16x4xf32>
    %c0_1 = arith.constant 0 : index
    %c0_2 = arith.constant 0 : index
    %1 = vector.load %arg2[%c0_1, %c0_2] : memref<4x32xf32, #tpu.memory_space<vmem>>, vector<4x32xf32>
    %2 = vector.extract_strided_slice %0 {offsets = [0, 0], sizes = [16, 1], strides = [1, 1]} : vector<16x4xf32> to vector<16x1xf32>
    %3 = vector.extract_strided_slice %1 {offsets = [0, 0], sizes = [1, 32], strides = [1, 1]} : vector<4x32xf32> to vector<1x32xf32>
    %4 = vector.broadcast %2 : vector<16x1xf32> to vector<16x32xf32>
    %5 = vector.broadcast %3 : vector<1x32xf32> to vector<16x32xf32>
    %6 = arith.mulf %4, %5 : vector<16x32xf32>
    %7 = vector.extract_strided_slice %0 {offsets = [0, 1], sizes = [16, 1], strides = [1, 1]} : vector<16x4xf32> to vector<16x1xf32>
    %8 = vector.extract_strided_slice %1 {offsets = [1, 0], sizes = [1, 32], strides = [1, 1]} : vector<4x32xf32> to vector<1x32xf32>
    %9 = vector.broadcast %7 : vector<16x1xf32> to vector<16x32xf32>
    %10 = vector.broadcast %8 : vector<1x32xf32> to vector<16x32xf32>
    %11 = arith.mulf %9, %10 : vector<16x32xf32>
    %12 = arith.addf %6, %11 : vector<16x32xf32>
    %13 = vector.extract_strided_slice %0 {offsets = [0, 2], sizes = [16, 1], strides = [1, 1]} : vector<16x4xf32> to vector<16x1xf32>
    %14 = vector.extract_strided_slice %1 {offsets = [2, 0], sizes = [1, 32], strides = [1, 1]} : vector<4x32xf32> to vector<1x32xf32>
    %15 = vector.broadcast %13 : vector<16x1xf32> to vector<16x32xf32>
    %16 = vector.broadcast %14 : vector<1x32xf32> to vector<16x32xf32>
    %17 = arith.mulf %15, %16 : vector<16x32xf32>
    %18 = arith.addf %12, %17 : vector<16x32xf32>
    %19 = vector.extract_strided_slice %0 {offsets = [0, 3], sizes = [16, 1], strides = [1, 1]} : vector<16x4xf32> to vector<16x1xf32>
    %20 = vector.extract_strided_slice %1 {offsets = [3, 0], sizes = [1, 32], strides = [1, 1]} : vector<4x32xf32> to vector<1x32xf32>
    %21 = vector.broadcast %19 : vector<16x1xf32> to vector<16x32xf32>
    %22 = vector.broadcast %20 : vector<1x32xf32> to vector<16x32xf32>
    %23 = arith.mulf %21, %22 : vector<16x32xf32>
    %24 = arith.addf %18, %23 : vector<16x32xf32>
    %c0_3 = arith.constant 0 : index
    %c0_4 = arith.constant 0 : index
    %25 = vector.load %arg3[%c0_3, %c0_4] : memref<1x32xf32, #tpu.memory_space<vmem>>, vector<1x32xf32>
    %26 = vector.broadcast %25 : vector<1x32xf32> to vector<16x32xf32>
    %27 = arith.addf %24, %26 : vector<16x32xf32>
    %c0_5 = arith.constant 0 : index
    %c0_6 = arith.constant 0 : index
    %28 = vector.load %arg4[%c0_5, %c0_6] : memref<16x32xf32, #tpu.memory_space<vmem>>, vector<16x32xf32>
    tpu.vector_store %arg4[%c0_5, %c0_6], %27 {strides = array<i32>} : memref<16x32xf32, #tpu.memory_space<vmem>>, vector<16x32xf32>,
    return
  }
  func.func @transform_0(%arg0: i32) -> (i32, i32) {
    %c0_i32 = arith.constant 0 : i32
    %c0_i32_0 = arith.constant 0 : i32
    return %arg0, %c0_i32 : i32, i32
  }
  func.func @transform_1(%arg0: i32) -> (i32, i32) {
    %c0_i32 = arith.constant 0 : i32
    %c0_i32_0 = arith.constant 0 : i32
    %c0_i32_1 = arith.constant 0 : i32
    return %c0_i32, %c0_i32_0 : i32, i32
  }
  func.func @transform_2(%arg0: i32) -> (i32, i32) {
    %c0_i32 = arith.constant 0 : i32
    %c0_i32_0 = arith.constant 0 : i32
    %c0_i32_1 = arith.constant 0 : i32
    return %c0_i32, %c0_i32_0 : i32, i32
  }
  func.func @transform_3(%arg0: i32) -> (i32, i32) {
    %c0_i32 = arith.constant 0 : i32
    %c0_i32_0 = arith.constant 0 : i32
    return %arg0, %c0_i32 : i32, i32
  }
}

</mosaic_0001>

<bundles_post_ra>
// kernel: tpu_custom_call.1
= control target key start
LH: loop header
LB: loop body
LE: loop exit
PB: predicated region body
PF: predicated region fallthrough
CT: control target
= control target key end

     0   :  { %v146_v1 = vmov 1   ;;  %v147_v2 = vmov 0   ;;  %s188_s0 = inlined_call_operand.vmem [shape: f32[16,4], index: 0, kind: input, shape index: {}]   ;;  %s189_s1 = inlined_call_operand.vmem [shape: f32[4,32], index: 1, kind: input, shape index: {}]   ;;  %s190_s2 = inlined_call_operand.vmem [shape: f32[1,32], index: 2, kind: input, shape index: {}]   ;;  %s191_s3 = inlined_call_operand.hbm [shape: f32[16,32], index: 3, kind: output, shape index: {}]  }
   0x1   :  { %v15_v0 = vld [vmem:[%s188_s0] sm:$0xff]  ;;  %119 = vset.pattern.permute.xlu1 %v146_v1  ;;  %118 = vset.pattern.permute.xlu0 %v147_v2 }
   0x2   :  { %8 = vsyncpa [#allocation3], 0  ;;  %35 = vperm.xlu1 %119, %v15_v0   ;;  %20 = vperm.xlu0 %118, %v15_v0   ;;  %v16_v3 = vld [vmem:[%s188_s0 + $0x8] sm:$0xff]  ;;  %v148_v4 = vmov 2   ;;  %v149_v5 = vmov 3   ;;  %v28_v6 = vlaneseq  ;;  %vm91_vm0 = vcmask 261120  }
   0x3   :  { %v17_v12 = vld [vmem:[%s189_s1] sm:$0xf]  ;;  %s150_s1 = smov [#allocation2]  }
   0x4   :  { %v29_v7 = vshrl.u32 %v28_v6, 7  ;;  %s99_s17 = sshll.u32 %s150_s1, 4  ;;  %v110_v37 = vld [vmem:[%s190_s2] ss:$0 sm:$0xff]  ;;  %s100_s17 = int_to_ptr.vmem [resolvable:$true] %s99_s17 }
   0x5   :  { %s124_s20 = scalar_lea.vmem %s100_s17, 256  ;;  %p129_p1 = scmp.lt.s32.totalorder %s100_s17, %s100_s17 }
   0x6   :  { %39 = vperm.xlu1 %119, %v16_v3   ;;  %25 = vperm.xlu0 %118, %v16_v3   ;;  %v44_v10 = vsub.s32 1, %v29_v7  ;;  %v30_v11 = vsub.s32 0, %v29_v7  ;;  %v60_v13 = vsub.s32 2, %v29_v7  ;;  %v76_v19 = vsub.s32 3, %v29_v7  ;;  %p125_p0 = scmp.ne.s32.totalorder %s100_s17, %s124_s20  ;;  %p130_p2 = scmp.lt.s32.totalorder %s124_s20, %s124_s20 }
   0x8   :  { %v45_v16 = vrot.slane %v17_v12, %v44_v10  ;;  %v31_v17 = vrot.slane %v17_v12, %v30_v11  ;;  %v61_v18 = vrot.slane %v17_v12, %v60_v13  ;;  %v77_v28 = vrot.slane %v17_v12, %v76_v19  ;;  %p131_p3 = por %p130_p2, %p129_p1 }
   0xa   :  { %121 = vset.pattern.permute.xlu1 %v148_v4  ;;  %120 = vset.pattern.permute.xlu0 %v148_v4  ;;  %p132_p4 = pnand %p131_p3, %p125_p0 }
   0xb   :  { %55 = vperm.xlu1 %121, %v16_v3   ;;  %51 = vperm.xlu0 %120, %v15_v0  }
   0xf   :  { %122 = vset.pattern.permute.xlu1 %v149_v5  ;;  %123 = vset.pattern.permute.xlu0 %v149_v5 }
  0x10   :  { %67 = vperm.xlu1 %122, %v15_v0   ;;  %71 = vperm.xlu0 %123, %v16_v3  }
  0x7d   :  { %v36_v8 = vpop.permute.xlu1 %35  ;;  %v21_v9 = vpop.permute.xlu0 %20 }
  0x7e   :  { %v46_v20 = vmul.f32 %v45_v16, %v36_v8  ;;  %v32_v21 = vmul.f32 %v31_v17, %v21_v9 }
  0x80   :  { %v48_v29 = vadd.f32 %v46_v20, %v32_v21 }
  0x81   :  { %v40_v14 = vpop.permute.xlu1 %39  ;;  %v26_v15 = vpop.permute.xlu0 %25 }
  0x82   :  { %v47_v22 = vmul.f32 %v45_v16, %v40_v14  ;;  %v33_v23 = vmul.f32 %v31_v17, %v26_v15 }
  0x84   :  { %v49_v30 = vadd.f32 %v47_v22, %v33_v23 }
  0x86   :  { %v56_v24 = vpop.permute.xlu1 %55  ;;  %v52_v25 = vpop.permute.xlu0 %51 }
  0x87   :  { %v63_v26 = vmul.f32 %v61_v18, %v56_v24  ;;  %v62_v27 = vmul.f32 %v61_v18, %v52_v25 }
  0x89   :  { %v65_v33 = vadd.f32 %v63_v26, %v49_v30  ;;  %v64_v34 = vadd.f32 %v62_v27, %v48_v29 }
  0x8b   :  { %v68_v31 = vpop.permute.xlu1 %67  ;;  %v72_v32 = vpop.permute.xlu0 %71 }
  0x8c   :  { %v78_v35 = vmul.f32 %v77_v28, %v68_v31  ;;  %v79_v36 = vmul.f32 %v77_v28, %v72_v32 }
  0x8e   :  { %v80_v38 = vadd.f32 %v78_v35, %v64_v34  ;;  %v81_v39 = vadd.f32 %v79_v36, %v65_v33 }
  0x90   :  { %v89_v40 = vadd.f32 %v110_v37, %v80_v38  ;;  %v90_v41 = vadd.f32 %v110_v37, %v81_v39 }
  0x92   :  { %92 = vst.msk [vmem:[#allocation2] sm:$0xff] %vm91_vm0, %v89_v40  ;;  %93 = vst.msk [vmem:[#allocation2 + $0x8] sm:$0xff] %vm91_vm0, %v90_v41 }
  0x93   :  { %135 = shalt.err (!%p132_p4)
}
  0x94   :  { %s151_s21 = smov 128   ;;  %s152_s22 = smov 8  }
  0x95   :  { %105 = dma.vmem_to_hbm [thread:$0]  %s100_s17, 256, %s191_s3, [#allocation3], %s151_s21, %s151_s21, %s152_s22  }
  0x96   :  { %144 = dma.done.wait [#allocation3], 256  }
  0x97   :  { %145 = vsyncadd [#allocation3], 4294967040 }
  0x98   :  { %109 = vsyncpa [#allocation3], 1 }

</bundles_post_ra>
